<compile_context>
chip_gen: v7x
topology: tpu7x:2x2x1
jax: 0.10.0
libtpu: 0.0.40
codegen_flags: <defaults>
</compile_context>

<pallas_src>
import functools

import jax
import jax.numpy as jnp
from jax.experimental import pallas as pl
from jax.experimental.pallas import tpu as pltpu


def _round_up(x, m):
    return ((x + m - 1) // m) * m


def mlp_net_kernel(x_ref, w1_ref, b1_ref, w2_ref, b2_ref, wh_ref, bh_ref, out_ref):
    # fc1 -> ReLU -> (dropout) -> fc2 -> ReLU -> (dropout) -> all heads fused in one matmul.
    # TODO(synk): Dropout(0.5) is treated as identity (inference mode). Training-mode dropout
    #             would use pltpu.prng_seed / pltpu.prng_random_bits for the mask + 2x scale.
    # MXU inputs are bf16, accumulation is f32; bias add / ReLU stay in f32 (no bf16 VPU on v5e).
    h1 = jnp.dot(x_ref[...], w1_ref[...], preferred_element_type=jnp.float32) + b1_ref[...]
    h1 = jnp.maximum(h1, 0.0)
    h2 = jnp.dot(h1.astype(jnp.bfloat16), w2_ref[...],
                 preferred_element_type=jnp.float32) + b2_ref[...]
    h2 = jnp.maximum(h2, 0.0)
    out_ref[...] = jnp.dot(h2.astype(jnp.bfloat16), wh_ref[...],
                           preferred_element_type=jnp.float32) + bh_ref[...]


@functools.partial(jax.jit, static_argnames=())
def mlp_net_forward(x, w1, b1, w2, b2, wh, bh):
    """Forward pass. Returns stacked logits of shape (B, T*N).

    Split into the per-task list (like the PyTorch module's `y`) outside of jit with
    `split_task_logits` if needed.
    """
    B = x.shape[0]
    D, U = w1.shape
    T, _, N = wh.shape

    # Flatten NCHW -> (B, D), exactly like x.view(x.size(0), -1).
    x_flat = x.reshape(B, -1).astype(jnp.float32)

    # Pad batch to a sublane multiple; pad fused head width to a lane-dense multiple of 128.
    B_pad = max(_round_up(B, 8), 8)
    TN = T * N
    N_pad = max(_round_up(TN, 128), 128)

    x_p = jnp.zeros((B_pad, D), jnp.float32).at[:B].set(x_flat)

    # Fuse all task heads: (T, U, N) -> (U, T*N), zero-pad last dim to N_pad.
    wh_cat = jnp.transpose(wh, (1, 0, 2)).reshape(U, TN)
    bh_cat = bh.reshape(1, TN)
    wh_p = jnp.zeros((U, N_pad), jnp.float32).at[:, :TN].set(wh_cat)
    bh_p = jnp.zeros((1, N_pad), jnp.float32).at[:, :TN].set(bh_cat)

    # bf16 matmul operands (biases stay f32).
    x_bf = x_p.astype(jnp.bfloat16)
    w1_bf = w1.astype(jnp.bfloat16)
    w2_bf = w2.astype(jnp.bfloat16)
    wh_bf = wh_p.astype(jnp.bfloat16)
    b1_f = b1.astype(jnp.float32)
    b2_f = b2.astype(jnp.float32)

    flops = 2 * B_pad * (D * U + U * U + U * N_pad)
    bytes_accessed = (
        x_bf.size * 2 + w1_bf.size * 2 + w2_bf.size * 2 + wh_bf.size * 2
        + b1_f.size * 4 + b2_f.size * 4 + bh_p.size * 4
        + B_pad * N_pad * 4
    )

    out = pl.pallas_call(
        mlp_net_kernel,
        out_shape=jax.ShapeDtypeStruct((B_pad, N_pad), jnp.float32),
        grid_spec=pltpu.PrefetchScalarGridSpec(
            num_scalar_prefetch=0,
            grid=(1,),  # single step: trunk computed once, all heads fused
            in_specs=[
                pl.BlockSpec((B_pad, D), lambda i: (0, 0)),   # x (bf16)
                pl.BlockSpec((D, U), lambda i: (0, 0)),       # fc1 weight (bf16)
                pl.BlockSpec((1, U), lambda i: (0, 0)),       # fc1 bias (f32)
                pl.BlockSpec((U, U), lambda i: (0, 0)),       # fc2 weight (bf16)
                pl.BlockSpec((1, U), lambda i: (0, 0)),       # fc2 bias (f32)
                pl.BlockSpec((U, N_pad), lambda i: (0, 0)),   # fused head weights (bf16)
                pl.BlockSpec((1, N_pad), lambda i: (0, 0)),   # fused head biases (f32)
            ],
            out_specs=pl.BlockSpec((B_pad, N_pad), lambda i: (0, 0)),  # lane-dense output
        ),
        compiler_params=pltpu.CompilerParams(dimension_semantics=("arbitrary",)),
        cost_estimate=pl.CostEstimate(
            flops=flops, transcendentals=0, bytes_accessed=bytes_accessed
        ),
    )(x_bf, w1_bf, b1_f, w2_bf, b2_f, wh_bf, bh_p)

    # Strip batch / lane padding; keep a single stacked slab (no per-task device slices).
    return out[:B, :TN]


def split_task_logits(stacked, task_info):
    """Optional host-side split into the per-task list, mirroring the PyTorch output."""
    N = task_info[0][1]
    return [stacked[:, t * N:(t + 1) * N] for t, _ in task_info]


def init_params(key, size, unitN, task_info):
    """Deterministic init matching PyTorch Linear shapes (stored transposed: (in, out))."""
    D = size * size
    T = len(task_info)
    N = task_info[0][1]
    assert all(n == N for _, n in task_info), "heads stacked => equal output widths"

    k1, k2, k3, k4, k5, k6 = jax.random.split(key, 6)
    s1 = 1.0 / jnp.sqrt(D)
    s2 = 1.0 / jnp.sqrt(unitN)
    w1 = jax.random.uniform(k1, (D, unitN), jnp.float32, -s1, s1)
    b1 = jax.random.uniform(k2, (1, unitN), jnp.float32, -s1, s1)
    w2 = jax.random.uniform(k3, (unitN, unitN), jnp.float32, -s2, s2)
    b2 = jax.random.uniform(k4, (1, unitN), jnp.float32, -s2, s2)
    wh = jax.random.uniform(k5, (T, unitN, N), jnp.float32, -s2, s2)
    bh = jax.random.uniform(k6, (T, 1, N), jnp.float32, -s2, s2)
    return w1, b1, w2, b2, wh, bh


def reference_forward(x, w1, b1, w2, b2, wh, bh):
    """Pure f32 reference mirroring the PyTorch module (dropout = identity)."""
    h = x.reshape(x.shape[0], -1).astype(jnp.float32)
    h = jnp.maximum(h @ w1 + b1, 0.0)
    h = jnp.maximum(h @ w2 + b2, 0.0)
    return [h @ wh[t] + bh[t] for t in range(wh.shape[0])]


if __name__ == "__main__":
    # Small config consistent with the module: inputsize=(16, 1) -> 16*16=256 features,
    # unitN=128 hidden units, two task heads of 16 classes each, batch=8.
    size = 16
    unitN = 128
    task_info = [(0, 16), (1, 16)]
    batch = 8

    key = jax.random.PRNGKey(0)
    kx, kp = jax.random.split(key)
    x = jax.random.normal(kx, (batch, 1, size, size), jnp.float32)  # NCHW like PyTorch
    params = init_params(kp, size, unitN, task_info)

    stacked = mlp_net_forward(x, *params)
    stacked = jax.block_until_ready(stacked)
    assert stacked.shape == (batch, len(task_info) * task_info[0][1])

    ys = split_task_logits(stacked, task_info)
    refs = reference_forward(x, *params)
    for y, r in zip(ys, refs):
        assert y.shape == (batch, task_info[0][1])
        # bf16 MXU operands vs f32 reference -> loose-but-safe tolerance.
        assert jnp.allclose(y, r, atol=5e-2, rtol=5e-2)

    print("KERNEL_OK")
</pallas_src>

<mosaic_0001>
module attributes {stable_mosaic.version = 11 : i64} {
  func.func @mlp_net_kernel(%arg0: i32, %arg1: memref<8x256xbf16, #tpu.memory_space<vmem>>, %arg2: memref<256x128xbf16, #tpu.memory_space<vmem>>, %arg3: memref<1x128xf32, #tpu.memory_space<vmem>>, %arg4: memref<128x128xbf16, #tpu.memory_space<vmem>>, %arg5: memref<1x128xf32, #tpu.memory_space<vmem>>, %arg6: memref<128x128xbf16, #tpu.memory_space<vmem>>, %arg7: memref<1x128xf32, #tpu.memory_space<vmem>>, %arg8: memref<8x128xf32, #tpu.memory_space<vmem>>) attributes {dimension_semantics = [#tpu.dimension_semantics<arbitrary>], iteration_bounds = array<i64: 1>, scalar_prefetch = 0 : i64, scratch_operands = 0 : i64, tpu.core_type = #tpu.core_type<tc>, window_params = [{pipeline_mode = #tpu.pipeline_mode<synchronous>, transform_indices = @transform_0, window_bounds = array<i64: 8, 256>}, {pipeline_mode = #tpu.pipeline_mode<synchronous>, transform_indices = @transform_1, window_bounds = array<i64: 256, 128>}, {pipeline_mode = #tpu.pipeline_mode<synchronous>, transform_indices = @transform_2, window_bounds = array<i64: 1, 128>}, {pipeline_mode = #tpu.pipeline_mode<synchronous>, transform_indices = @transform_3, window_bounds = array<i64: 128, 128>}, {pipeline_mode = #tpu.pipeline_mode<synchronous>, transform_indices = @transform_4, window_bounds = array<i64: 1, 128>}, {pipeline_mode = #tpu.pipeline_mode<synchronous>, transform_indices = @transform_5, window_bounds = array<i64: 128, 128>}, {pipeline_mode = #tpu.pipeline_mode<synchronous>, transform_indices = @transform_6, window_bounds = array<i64: 1, 128>}, {pipeline_mode = #tpu.pipeline_mode<synchronous>, transform_indices = @transform_7, window_bounds = array<i64: 8, 128>}]} {
    %c0 = arith.constant 0 : index
    %c0_0 = arith.constant 0 : index
    %0 = vector.load %arg1[%c0, %c0_0] : memref<8x256xbf16, #tpu.memory_space<vmem>>, vector<8x256xbf16>
    %c0_1 = arith.constant 0 : index
    %c0_2 = arith.constant 0 : index
    %1 = vector.load %arg2[%c0_1, %c0_2] : memref<256x128xbf16, #tpu.memory_space<vmem>>, vector<256x128xbf16>
    %cst = arith.constant dense<0.000000e+00> : vector<8x128xf32>
    %2 = tpu.matmul %0, %1, %cst {dimension_numbers = #tpu.dot_dimension_numbers<[1], [0], [0], [1], [0, 0, 1, 1], [], []>} : vector<8x256xbf16>, vector<256x128xbf16>, vector<8x128xf32> -> vector<8x128xf32>
    %c0_3 = arith.constant 0 : index
    %c0_4 = arith.constant 0 : index
    %3 = vector.load %arg3[%c0_3, %c0_4] : memref<1x128xf32, #tpu.memory_space<vmem>>, vector<1x128xf32>
    %4 = vector.broadcast %3 : vector<1x128xf32> to vector<8x128xf32>
    %5 = arith.addf %2, %4 : vector<8x128xf32>
    %cst_5 = arith.constant 0.000000e+00 : f32
    %6 = vector.broadcast %cst_5 : f32 to vector<8x128xf32>
    %7 = arith.maximumf %5, %6 : vector<8x128xf32>
    %8 = arith.truncf %7 : vector<8x128xf32> to vector<8x128xbf16>
    %c0_6 = arith.constant 0 : index
    %c0_7 = arith.constant 0 : index
    %9 = vector.load %arg4[%c0_6, %c0_7] : memref<128x128xbf16, #tpu.memory_space<vmem>>, vector<128x128xbf16>
    %cst_8 = arith.constant dense<0.000000e+00> : vector<8x128xf32>
    %10 = tpu.matmul %8, %9, %cst_8 {dimension_numbers = #tpu.dot_dimension_numbers<[1], [0], [0], [1], [0, 0, 1, 1], [], []>} : vector<8x128xbf16>, vector<128x128xbf16>, vector<8x128xf32> -> vector<8x128xf32>
    %c0_9 = arith.constant 0 : index
    %c0_10 = arith.constant 0 : index
    %11 = vector.load %arg5[%c0_9, %c0_10] : memref<1x128xf32, #tpu.memory_space<vmem>>, vector<1x128xf32>
    %12 = vector.broadcast %11 : vector<1x128xf32> to vector<8x128xf32>
    %13 = arith.addf %10, %12 : vector<8x128xf32>
    %cst_11 = arith.constant 0.000000e+00 : f32
    %14 = vector.broadcast %cst_11 : f32 to vector<8x128xf32>
    %15 = arith.maximumf %13, %14 : vector<8x128xf32>
    %16 = arith.truncf %15 : vector<8x128xf32> to vector<8x128xbf16>
    %c0_12 = arith.constant 0 : index
    %c0_13 = arith.constant 0 : index
    %17 = vector.load %arg6[%c0_12, %c0_13] : memref<128x128xbf16, #tpu.memory_space<vmem>>, vector<128x128xbf16>
    %cst_14 = arith.constant dense<0.000000e+00> : vector<8x128xf32>
    %18 = tpu.matmul %16, %17, %cst_14 {dimension_numbers = #tpu.dot_dimension_numbers<[1], [0], [0], [1], [0, 0, 1, 1], [], []>} : vector<8x128xbf16>, vector<128x128xbf16>, vector<8x128xf32> -> vector<8x128xf32>
    %c0_15 = arith.constant 0 : index
    %c0_16 = arith.constant 0 : index
    %19 = vector.load %arg7[%c0_15, %c0_16] : memref<1x128xf32, #tpu.memory_space<vmem>>, vector<1x128xf32>
    %20 = vector.broadcast %19 : vector<1x128xf32> to vector<8x128xf32>
    %21 = arith.addf %18, %20 : vector<8x128xf32>
    %c0_17 = arith.constant 0 : index
    %c0_18 = arith.constant 0 : index
    %22 = vector.load %arg8[%c0_17, %c0_18] : memref<8x128xf32, #tpu.memory_space<vmem>>, vector<8x128xf32>
    tpu.vector_store %arg8[%c0_17, %c0_18], %21 {strides = array<i32>} : memref<8x128xf32, #tpu.memory_space<vmem>>, vector<8x128xf32>,
    return
  }
  func.func @transform_0(%arg0: i32) -> (i32, i32) {
    %c0_i32 = arith.constant 0 : i32
    %c0_i32_0 = arith.constant 0 : i32
    %c0_i32_1 = arith.constant 0 : i32
    return %c0_i32, %c0_i32_0 : i32, i32
  }
  func.func @transform_1(%arg0: i32) -> (i32, i32) {
    %c0_i32 = arith.constant 0 : i32
    %c0_i32_0 = arith.constant 0 : i32
    %c0_i32_1 = arith.constant 0 : i32
    return %c0_i32, %c0_i32_0 : i32, i32
  }
  func.func @transform_2(%arg0: i32) -> (i32, i32) {
    %c0_i32 = arith.constant 0 : i32
    %c0_i32_0 = arith.constant 0 : i32
    %c0_i32_1 = arith.constant 0 : i32
    return %c0_i32, %c0_i32_0 : i32, i32
  }
  func.func @transform_3(%arg0: i32) -> (i32, i32) {
    %c0_i32 = arith.constant 0 : i32
    %c0_i32_0 = arith.constant 0 : i32
    %c0_i32_1 = arith.constant 0 : i32
    return %c0_i32, %c0_i32_0 : i32, i32
  }
  func.func @transform_4(%arg0: i32) -> (i32, i32) {
    %c0_i32 = arith.constant 0 : i32
    %c0_i32_0 = arith.constant 0 : i32
    %c0_i32_1 = arith.constant 0 : i32
    return %c0_i32, %c0_i32_0 : i32, i32
  }
  func.func @transform_5(%arg0: i32) -> (i32, i32) {
    %c0_i32 = arith.constant 0 : i32
    %c0_i32_0 = arith.constant 0 : i32
    %c0_i32_1 = arith.constant 0 : i32
    return %c0_i32, %c0_i32_0 : i32, i32
  }
  func.func @transform_6(%arg0: i32) -> (i32, i32) {
    %c0_i32 = arith.constant 0 : i32
    %c0_i32_0 = arith.constant 0 : i32
    %c0_i32_1 = arith.constant 0 : i32
    return %c0_i32, %c0_i32_0 : i32, i32
  }
  func.func @transform_7(%arg0: i32) -> (i32, i32) {
    %c0_i32 = arith.constant 0 : i32
    %c0_i32_0 = arith.constant 0 : i32
    %c0_i32_1 = arith.constant 0 : i32
    return %c0_i32, %c0_i32_0 : i32, i32
  }
}

</mosaic_0001>

<bundles_post_ra>
// kernel: mlp_net_forward.1
= control target key start
LH: loop header
LB: loop body
LE: loop exit
PB: predicated region body
PF: predicated region fallthrough
CT: control target
= control target key end

     0   :  { %v630_v2 = vmov 0.0   ;;  %s811_s0 = inlined_call_operand.vmem [shape: bf16[8,256], index: 0, kind: input, shape index: {}]   ;;  %s812_s1 = inlined_call_operand.vmem [shape: bf16[256,128], index: 1, kind: input, shape index: {}]   ;;  %s813_s2 = inlined_call_operand.vmem [shape: f32[1,128], index: 2, kind: input, shape index: {}]   ;;  %s814_s3 = inlined_call_operand.vmem [shape: bf16[128,128], index: 3, kind: input, shape index: {}]   ;;  %s815_s4 = inlined_call_operand.vmem [shape: f32[1,128], index: 4, kind: input, shape index: {}]   ;;  %s816_s5 = inlined_call_operand.vmem [shape: bf16[128,128], index: 5, kind: input, shape index: {}]   ;;  %s817_s6 = inlined_call_operand.vmem [shape: f32[1,128], index: 6, kind: input, shape index: {}]   ;;  %s818_s7 = inlined_call_operand.hbm [shape: f32[8,128], index: 7, kind: output, shape index: {}]  }
   0x1   :  { %v572_v0 = vld [vmem:[%s812_s1 + $0x40] sm:$0xff]   ;;  %529 = vmatprep.subr.bf16.mxu1 %v630_v2  ;;  %v574_v3 = vld [vmem:[%s812_s1 + $0x48] sm:$0xff]   ;;  %v576_v5 = vld [vmem:[%s812_s1 + $0x50] sm:$0xff]  }
   0x2   :  { %v573_v1 = vld [vmem:[%s812_s1] sm:$0xff]   ;;  %489 = vmatprep.subr.bf16.mxu0 %v572_v0  ;;  %v575_v4 = vld [vmem:[%s812_s1 + $0x8] sm:$0xff]   ;;  %v577_v6 = vld [vmem:[%s812_s1 + $0x10] sm:$0xff]  }
   0x3   :  { %490 = vmatpush3.bf16.msra.mxu0 %v573_v1  ;;  %v578_v7 = vld [vmem:[%s812_s1 + $0x58] sm:$0xff]   ;;  %v580_v9 = vld [vmem:[%s812_s1 + $0x60] sm:$0xff]   ;;  %v582_v11 = vld [vmem:[%s812_s1 + $0x68] sm:$0xff]  }
   0x4   :  { %491 = vmatprep.subr.bf16.mxu0 %v574_v3  ;;  %v579_v8 = vld [vmem:[%s812_s1 + $0x18] sm:$0xff]   ;;  %v581_v10 = vld [vmem:[%s812_s1 + $0x20] sm:$0xff]   ;;  %v583_v15 = vld [vmem:[%s812_s1 + $0x28] sm:$0xff]  }
   0x5   :  { %v28_v12 = vld [vmem:[%s811_s0] sm:$0xff]  ;;  %v584_v16 = vld [vmem:[%s812_s1 + $0x70] sm:$0xff]   ;;  %v591_v17 = vld [vmem:[%s814_s3 + $0x8] sm:$0xff]  }
   0x6   :  { %v454_v13 = vcombine.high %v28_v12, %v28_v12  ;;  %v590_v14 = vld [vmem:[%s814_s3] sm:$0xff]   ;;  %v585_v18 = vld [vmem:[%s812_s1 + $0x30] sm:$0xff]   ;;  %v586_v19 = vld [vmem:[%s812_s1 + $0x78] sm:$0xff]  }
   0x7   :  { %492 = vmatpush3.bf16.msra.mxu0 %v575_v4  ;;  %530 = vmatpush3.bf16.msra.mxu1 %v590_v14  ;;  %v592_v20 = vld [vmem:[%s814_s3 + $0x10] sm:$0xff]   ;;  %v587_v21 = vld [vmem:[%s812_s1 + $0x38] sm:$0xff]  }
   0x8   :  { %493 = vmatprep.subr.bf16.mxu0 %v576_v5  ;;  %203 = vmatprep.mubr.bf16.mxu0 %v454_v13  ;;  %v593_v22 = vld [vmem:[%s814_s3 + $0x18] sm:$0xff]  }
   0x9   :  { %531 = vmatprep.subr.bf16.mxu1 %v630_v2 }
   0xb   :  { %494 = vmatpush3.bf16.msra.mxu0 %v577_v6  ;;  %532 = vmatpush3.bf16.msra.mxu1 %v591_v17 }
   0xc   :  { %495 = vmatprep.subr.bf16.mxu0 %v578_v7  ;;  %533 = vmatprep.subr.bf16.mxu1 %v630_v2 }
   0xf   :  { %496 = vmatpush3.bf16.msra.mxu0 %v579_v8  ;;  %534 = vmatpush3.bf16.msra.mxu1 %v592_v20 }
  0x10   :  { %497 = vmatprep.subr.bf16.mxu0 %v580_v9  ;;  %535 = vmatprep.subr.bf16.mxu1 %v630_v2 }
  0x13   :  { %498 = vmatpush3.bf16.msra.mxu0 %v581_v10 }
  0x14   :  { %499 = vmatprep.subr.bf16.mxu0 %v582_v11 }
  0x17   :  { %500 = vmatpush3.bf16.msra.mxu0 %v583_v15 }
  0x18   :  { %501 = vmatprep.subr.bf16.mxu0 %v584_v16 }
  0x1b   :  { %502 = vmatpush3.bf16.msra.mxu0 %v585_v18 }
  0x1c   :  { %503 = vmatprep.subr.bf16.mxu0 %v586_v19 }
  0x1d   :  { %12 = vsyncpa [#allocation3], 0  ;;  %v453_v23 = vcombine.low %v28_v12, %v28_v12  ;;  %536 = vmatpush3.bf16.msra.mxu1 %v593_v22  ;;  %v594_v24 = vld [vmem:[%s814_s3 + $0x20] sm:$0xff]   ;;  %v595_v25 = vld [vmem:[%s814_s3 + $0x28] sm:$0xff]   ;;  %vm631_vm0 = vmmov 0   ;;  %s632_s21 = smov [#allocation2]  }
  0x1e   :  { %537 = vmatprep.subr.bf16.mxu1 %v630_v2  ;;  %v596_v26 = vld [vmem:[%s814_s3 + $0x30] sm:$0xff]   ;;  %v597_v27 = vld [vmem:[%s814_s3 + $0x38] sm:$0xff]   ;;  %545 = vmatprep.mubr.msk.bf16.mxu1 %vm631_vm0, %v630_v2  ;;  %v598_v28 = vld [vmem:[%s816_s5] sm:$0xff]   ;;  %s444_s22 = sshll.u32 %s632_s21, 4  ;;  %s445_s22 = int_to_ptr.vmem [resolvable:$true] %s444_s22 }
  0x1f   :  { %504 = vmatpush3.bf16.msra.mxu0 %v587_v21  ;;  %v599_v29 = vld [vmem:[%s816_s5 + $0x8] sm:$0xff]   ;;  %v600_v30 = vld [vmem:[%s816_s5 + $0x10] sm:$0xff]   ;;  %v601_v31 = vld [vmem:[%s816_s5 + $0x18] sm:$0xff]   ;;  %p611_p1 = scmp.lt.s32.totalorder %s445_s22, %s445_s22 }
  0x20   :  { %549 = vmatprep.subr.bf16.mxu0 %v630_v2  ;;  %v602_v32 = vld [vmem:[%s816_s5 + $0x20] sm:$0xff]   ;;  %v603_v33 = vld [vmem:[%s816_s5 + $0x28] sm:$0xff]   ;;  %v604_v43 = vld [vmem:[%s816_s5 + $0x30] sm:$0xff]  }
  0x21   :  { %538 = vmatpush3.bf16.msra.mxu1 %v594_v24  ;;  %v452_v35 = vld [vmem:[%s813_s2] ss:$0 sm:$0xff]  ;;  %v605_v44 = vld [vmem:[%s816_s5 + $0x38] sm:$0xff]  }
  0x22   :  { %204 = vmatmul.mubr.bf16.vlgmr.msra.gmra.mrb[0].mxu0 %v453_v23  ;;  %539 = vmatprep.subr.bf16.mxu1 %v630_v2  ;;  %v471_v45 = vld [vmem:[%s815_s4] ss:$0 sm:$0xff]  ;;  %s606_s4 = scalar_lea.vmem %s445_s22, 128 }
  0x23   :  { %565 = vmatprep.mubr.msk.bf16.mxu0 %vm631_vm0, %v630_v2  ;;  %550 = vmatpush3.bf16.msra.mxu0 %v598_v28  ;;  %v480_v53 = vld [vmem:[%s817_s6] ss:$0 sm:$0xff]  ;;  %p607_p0 = scmp.ne.s32.totalorder %s445_s22, %s606_s4  ;;  %p612_p2 = scmp.lt.s32.totalorder %s606_s4, %s606_s4 }
  0x24   :  { %551 = vmatprep.subr.bf16.mxu0 %v630_v2 }
  0x25   :  { %540 = vmatpush3.bf16.msra.mxu1 %v595_v25  ;;  %p613_p3 = por %p612_p2, %p611_p1 }
  0x26   :  { %541 = vmatprep.subr.bf16.mxu1 %v630_v2 }
  0x27   :  { %552 = vmatpush3.bf16.msra.mxu0 %v599_v29  ;;  %p614_p4 = pnand %p613_p3, %p607_p0 }
  0x28   :  { %553 = vmatprep.subr.bf16.mxu0 %v630_v2 }
  0x29   :  { %542 = vmatpush3.bf16.msra.mxu1 %v596_v26 }
  0x2a   :  { %543 = vmatprep.subr.bf16.mxu1 %v630_v2 }
  0x2b   :  { %554 = vmatpush3.bf16.msra.mxu0 %v600_v30 }
  0x2c   :  { %555 = vmatprep.subr.bf16.mxu0 %v630_v2 }
  0x2d   :  { %544 = vmatpush3.bf16.msra.mxu1 %v597_v27 }
  0x2f   :  { %556 = vmatpush3.bf16.msra.mxu0 %v601_v31 }
  0x30   :  { %557 = vmatprep.subr.bf16.mxu0 %v630_v2 }
  0x33   :  { %558 = vmatpush3.bf16.msra.mxu0 %v602_v32 }
  0x34   :  { %559 = vmatprep.subr.bf16.mxu0 %v630_v2 }
  0x37   :  { %560 = vmatpush3.bf16.msra.mxu0 %v603_v33 }
  0x38   :  { %561 = vmatprep.subr.bf16.mxu0 %v630_v2 }
  0x3b   :  { %562 = vmatpush3.bf16.msra.mxu0 %v604_v43 }
  0x3c   :  { %563 = vmatprep.subr.bf16.mxu0 %v630_v2 }
  0x3f   :  { %564 = vmatpush3.bf16.msra.mxu0 %v605_v44 }
  0xf5   :  { %v505_v34 = vpop.f32.mrb[0].mxu0 }
  0xf6   :  { %v506_v36 = vpop.f32.mrb[1].mxu0 }
  0xf7   :  { %v507_v37 = vadd.f32 %v506_v36, %v505_v34  ;;  %v508_v38 = vpop.f32.mrb[2].mxu0 }
  0xf8   :  { %v509_v39 = vpop.f32.mrb[3].mxu0 }
  0xf9   :  { %v206_v40 = vadd.f32 %v507_v37, %v452_v35 }
  0xfb   :  { %v211_v41 = vmax.f32 %v206_v40, 0.0 }
  0xfd   :  { %v212_v42 = vpack.c.bf16 %v211_v41, %v211_v41 }
  0xff   :  { %546 = vmatmul.mubr.bf16.vlgmr.msra.gmra.mrb[0].mxu1 %v212_v42 }
 0x1d2   :  { %v318_v46 = vpop.f32.mrb[0].mxu1 }
 0x1d3   :  { %v319_v47 = vadd.f32 %v471_v45, %v318_v46  ;;  %v547_v48 = vpop.f32.mrb[1].mxu1 }
 0x1d4   :  { %v321_v49 = vpop.f32.mrb[2].mxu1 }
 0x1d5   :  { %v324_v50 = vmax.f32 %v319_v47, 0.0  ;;  %v548_v51 = vpop.f32.mrb[3].mxu1 }
 0x1d7   :  { %v325_v52 = vpack.c.bf16 %v324_v50, %v324_v50 }
 0x1d9   :  { %566 = vmatmul.mubr.bf16.vlgmr.msra.gmra.mrb[4].mxu0 %v325_v52 }
 0x2ac   :  { %v431_v54 = vpop.f32.mrb[4].mxu0 }
 0x2ad   :  { %v432_v55 = vadd.f32 %v480_v53, %v431_v54  ;;  %v567_v56 = vpop.f32.mrb[5].mxu0 }
 0x2ae   :  { %v434_v57 = vpop.f32.mrb[6].mxu0 }
 0x2af   :  { %437 = vst [vmem:[#allocation2] sm:$0xff] %v432_v55  ;;  %v568_v58 = vpop.f32.mrb[7].mxu0 }
 0x2b0   :  { %617 = shalt.err (!%p614_p4)
}
 0x2b1   :  { %s618_s6 = scalar_lea.hbm %s818_s7, 128 }
 0x2b2   :  { %p619_p5 = scmp.ne.s32.totalorder %s818_s7, %s618_s6  ;;  %p622_p6 = scmp.lt.u32.totalorder %s618_s6, %s818_s7 }
 0x2b4   :  { %p624_p7 = pnand %p622_p6, %p619_p5 }
 0x2b6   :  { %627 = shalt.err (!%p624_p7)
}
 0x2b7   :  { %447 = dma.vmem_to_hbm [thread:$0]  %s445_s22, 128, %s818_s7, [#allocation3]  }
 0x2b8   :  { %628 = dma.done.wait [#allocation3], 128  }
 0x2b9   :  { %629 = vsyncadd [#allocation3], 4294967168 }
 0x2ba   :  { %451 = vsyncpa [#allocation3], 1 }

</bundles_post_ra>
